<compile_context>
chip_gen: v7x
topology: tpu7x:2x2x1
jax: 0.10.0
libtpu: 0.0.40
codegen_flags: <defaults>
</compile_context>

<pallas_src>
import functools

import jax
import jax.numpy as jnp
import numpy as np
from jax.experimental import pallas as pl
from jax.experimental.pallas import tpu as pltpu

EPS = 1e-7
MIN_NORM = 1e-15
NORMALIZATION_FACTOR = 100.0   # module default, aggregation_method='sum'
LANE = 128


# ----------------------------- Lorentz math (traced inside kernels) ----------

def _col_idx(shape):
    return jax.lax.broadcasted_iota(jnp.int32, shape, dimension=len(shape) - 1)


def _arcosh(x):
    x = jnp.maximum(x, 1.0 + EPS)
    return jnp.log(x + jnp.sqrt(x * x - 1.0))


def _linner(x, y):
    # Minkowski inner product <x,y> = -x0*y0 + sum_{i>=1} xi*yi   (keepdim)
    return (jnp.sum(x * y, axis=-1, keepdims=True)
            - 2.0 * x[..., 0:1] * y[..., 0:1])


def _proj_tan0(u):
    return jnp.where(_col_idx(u.shape) == 0, 0.0, u)


def _logmap0(x):
    d = _arcosh(x[..., 0:1])
    y = _proj_tan0(x)
    inv_yn = jax.lax.rsqrt(
        jnp.maximum(jnp.sum(y * y, axis=-1, keepdims=True), MIN_NORM))
    return d * y * inv_yn


def _sinh_cosh(un):
    # one exp() instead of separate sinh/cosh (EUP is a single VLIW slot).
    e = jnp.exp(un)
    inv_e = 1.0 / e
    return 0.5 * (e - inv_e), 0.5 * (e + inv_e)


def _expmap0(u):
    u = _proj_tan0(u)
    sq = jnp.maximum(jnp.sum(u * u, axis=-1, keepdims=True), MIN_NORM)
    un = jnp.sqrt(sq)
    sh, ch = _sinh_cosh(un)
    res = sh * jax.lax.rsqrt(sq) * u
    return jnp.where(_col_idx(u.shape) == 0, ch, res)


def _proju(x, u):
    return u + _linner(x, u) * x


def _expmap(x, u):
    sq = jnp.maximum(_linner(u, u), MIN_NORM)
    un = jnp.sqrt(sq)
    sh, ch = _sinh_cosh(un)
    return ch * x + sh * jax.lax.rsqrt(sq) * u


def _transp0(y, v):
    # parallel transport from origin o=(1,0,...,0) to y (exact reciprocal:
    # runs once per node, approx reciprocal not worth the error).
    coef = _linner(y, v) / (1.0 + y[..., 0:1])
    o_plus_y = jnp.where(_col_idx(y.shape) == 0, y + 1.0, y)
    return v + coef * o_plus_y


# ----------------------------- Pallas kernels --------------------------------

def hyp_linear_kernel(x_ref, w_ref, b_ref, w1r_ref, w1c_ref, b1_ref,
                      xh_ref, hr_ref, hc_ref):
    """HypLinear plus the per-node halves of the DenseAtt first layer."""
    x = x_ref[...]
    xt = _logmap0(x)
    xl = jnp.dot(xt, w_ref[...], preferred_element_type=jnp.float32)
    xl = _proj_tan0(xl)
    xh = _expmap0(xl)
    bias = _proj_tan0(jnp.broadcast_to(b_ref[...], xh.shape))
    bias = _transp0(xh, bias)
    res = _expmap(xh, bias)
    xh_ref[...] = res

    # tangent at the origin; only consumed by the attention MLP -> bf16.
    t = _logmap0(res).astype(jnp.bfloat16)
    hr = (jnp.dot(t, w1r_ref[...], preferred_element_type=jnp.float32)
          + b1_ref[...])
    hc = jnp.dot(t, w1c_ref[...], preferred_element_type=jnp.float32)
    hr_ref[...] = hr.astype(jnp.bfloat16)
    hc_ref[...] = hc.astype(jnp.bfloat16)


def hyp_agg_norm_act_kernel(xr_ref, xc_ref, hr_ref, hc_ref, dT_ref, mT_ref,
                            w1d_ref, w2_ref, b2_ref, gamma_ref, beta_ref,
                            o_ref, *, f_real, col_chunk, att_dtype):
    """Per-edge attention, weighted log-map aggregation (segment sum over the
    rows of this block of the fully-connected row-major adjacency), expmap back
    onto the manifold, Lorentz LayerNorm and activation -- fully fused.

    Per-edge tensors live as [cols, rows, Fp] broadcasts of the resident
    per-node blocks (no exp_mat / red_mat matmuls, no concatenated copies);
    the column axis is processed in chunks to bound VMEM."""
    n = xc_ref.shape[0]
    tile_r = xr_ref.shape[1]
    fp = xr_ref.shape[2]

    xr3 = xr_ref[...]                            # [1, R, Fp] f32
    xr2 = xr_ref[0]                              # [R, Fp]    (2-D view for tail)
    time0 = jax.lax.broadcasted_iota(jnp.int32, xr3.shape, 2) == 0
    xr3m = jnp.where(time0, -xr3, xr3)           # Minkowski sign on time coord

    hr3 = hr_ref[...].astype(att_dtype)          # [1, R, Fp]
    w1d = w1d_ref[...].astype(att_dtype)         # [2, 1, Fp]
    w1d_dist = w1d[0:1]
    w1d_geo = w1d[1:2]
    w2 = w2_ref[...].astype(att_dtype)           # [1, 1, Fp]
    b2 = b2_ref[...]                             # [1, 1, 1]

    agg = jnp.zeros((tile_r, fp), jnp.float32)
    coef = jnp.zeros((tile_r, 1), jnp.float32)

    for c0 in range(0, n, col_chunk):
        nc = min(col_chunk, n - c0)
        xc = xc_ref[c0:c0 + nc]                  # [C, 1, Fp] f32
        hc = hc_ref[c0:c0 + nc].astype(att_dtype)
        dT = dT_ref[c0:c0 + nc]                  # [C, R, 1] f32
        mT = mT_ref[c0:c0 + nc]                  # [C, R, 1] f32

        # Lorentz inner product / geodesic distance (consistent clamp so the
        # geo / sqrt(<x,y>^2 - 1) ratio stays ~1 on self loops).
        inner = jnp.sum(xc * xr3m, axis=-1, keepdims=True)    # [C, R, 1]
        u = jnp.maximum(-inner, 1.0 + EPS)
        sqm1 = u * u - 1.0
        geo = jnp.log(u + jnp.sqrt(sqm1))                      # arcosh
        wlog = geo * jax.lax.rsqrt(sqm1)

        # DenseAtt: per-node halves precomputed in kernel 1; pure broadcasts.
        h1 = (hr3 + hc
              + dT.astype(att_dtype) * w1d_dist
              + geo.astype(att_dtype) * w1d_geo)               # [C, R, Fp]
        h1 = h1 * jax.nn.sigmoid(h1)                           # SiLU
        head = jnp.sum((h1 * w2).astype(jnp.float32),
                       axis=-1, keepdims=True)                 # [C, R, 1]
        att = jax.nn.sigmoid(head + b2) * mT                   # [C, R, 1]

        # agg = segment_sum(att * logmap_{x_row}(x_col));
        #   logmap_x(y) = arcosh(-<x,y>) / sqrt(<x,y>^2-1) * (y + <x,y> x)
        s = att * wlog                                         # [C, R, 1]
        agg = agg + jnp.sum(s * xc, axis=0)                    # [R, Fp]
        coef = coef + jnp.sum(s * inner, axis=0)               # [R, 1]

    out = (agg + coef * xr2) * (1.0 / NORMALIZATION_FACTOR)    # [R, Fp]
    support = _proju(xr2, out)
    y = _expmap(xr2, support)

    # HNorm: LayerNorm over the real feature dims 1..f_real-1 (Lorentz).
    h = _logmap0(y)
    col = _col_idx(h.shape)
    in_norm = jnp.logical_and(col >= 1, col < f_real)
    fmask = in_norm.astype(h.dtype)
    inv_n = 1.0 / float(f_real - 1)
    mu = jnp.sum(h * fmask, axis=-1, keepdims=True) * inv_n
    var = jnp.sum(((h - mu) ** 2) * fmask, axis=-1, keepdims=True) * inv_n
    hn = (h - mu) * jax.lax.rsqrt(var + 1e-5) * gamma_ref[...] + beta_ref[...]
    h = jnp.where(in_norm, hn, 0.0)
    y = _expmap0(h)

    # HypAct: act (SiLU) on the tangent at the origin, expmap0 on manifold_out.
    xt = _logmap0(y)
    xt = xt * jax.nn.sigmoid(xt)
    xt = _proj_tan0(xt)
    o_ref[...] = _expmap0(xt)


# ----------------------------- Wrapper ----------------------------------------

def _round_up(x, m):
    return ((x + m - 1) // m) * m


def _pad_cols(a, width):
    pad = width - a.shape[-1]
    return a if pad == 0 else jnp.pad(a, ((0, 0), (0, pad)))


def _pad_2d(a, rows, cols):
    return jnp.pad(a, ((0, rows - a.shape[0]), (0, cols - a.shape[1])))


def _pick_row_tile(n, pref=128):
    """Largest multiple of 8 that divides n (<= pref); n itself otherwise."""
    if n <= 8 or n % 8 != 0:
        return n
    best = 8
    for t in range(8, min(n, pref) + 1, 8):
        if n % t == 0:
            best = t
    return best


def _vmem_limit_bytes():
    """Per-generation scoped-VMEM limit (v5e/v6e: 128 MiB, v7x: 64 MiB)."""
    cap = 64 * 1024 * 1024
    try:
        cap = int(pltpu.get_tpu_info().vmem_capacity_bytes)
    except Exception:
        pass
    return max(32 * 1024 * 1024, min((cap * 3) // 4, 96 * 1024 * 1024))


def _att_dtype():
    """bf16 attention MLP on v6e/v7x (bf16 VPU/EUP); f32 on older parts."""
    kind = ""
    try:
        kind = jax.devices()[0].device_kind.lower()
    except Exception:
        pass
    if any(("v%d" % g) in kind for g in (2, 3, 4, 5)):
        return jnp.float32
    return jnp.bfloat16


def _pick_col_chunk(n, tile_r, fp, att_bytes, vmem_limit):
    """Bound the per-chunk [cols, rows, Fp] intermediates in VMEM."""
    budget = max(vmem_limit // 6, 2 * 1024 * 1024)
    per_col = tile_r * fp * (8 + 2 * att_bytes) + 8 * fp * 6
    cols = max(8, budget // max(per_col, 1))
    if cols >= n:
        return n
    return max(8, (cols // 8) * 8)


def hgc_layer_forward(inputs, params):
    """One HGCLayer forward pass.

    `edges` must be the fully-connected row-major adjacency (incl. self loops)
    that HGCN.get_adj_matrix produces; the row/col arrays are implicit in that
    layout, so no HBM gather is needed (node_mask is passed through untouched,
    exactly like the reference HGCLayer.forward)."""
    h, distances, edges, node_mask, edge_mask = inputs
    n = h.shape[0]
    f_in = h.shape[1]
    f_out = params["w_lin"].shape[1]
    assert distances.shape[0] == n * n and edge_mask.shape[0] == n * n, (
        "expected the fully-connected row-major edge set of HGCN.get_adj_matrix")

    fp_in = _round_up(f_in, LANE)
    fp_out = _round_up(f_out, LANE)
    vmem_limit = _vmem_limit_bytes()
    att_dtype = _att_dtype()
    att_bytes = 2 if att_dtype == jnp.bfloat16 else 4

    # lane-dense (multiple-of-128) feature padding; padded lanes stay zero.
    h_p = _pad_cols(h, fp_in)
    w_lin = _pad_2d(params["w_lin"], fp_in, fp_out)
    bias = _pad_cols(params["bias"], fp_out)
    w1r = _pad_2d(params["att_w1_row"], fp_out, fp_out).astype(jnp.bfloat16)
    w1c = _pad_2d(params["att_w1_col"], fp_out, fp_out).astype(jnp.bfloat16)
    w1d3 = _pad_cols(params["att_w1_edge"], fp_out).reshape(2, 1, fp_out)
    b1 = _pad_cols(params["att_b1"], fp_out)
    w23 = _pad_cols(params["att_w2"], fp_out).reshape(1, 1, fp_out)
    b23 = params["att_b2"].reshape(1, 1, 1)
    gamma = _pad_cols(params["ln_gamma"], fp_out)
    beta = _pad_cols(params["ln_beta"], fp_out)

    def const_spec(shape):
        return pl.BlockSpec(shape, lambda i: (0,) * len(shape))

    # --- kernel 1: HypLinear + per-node half of DenseAtt ----------------------
    tile_n = _pick_row_tile(n, 256)
    node_in = pl.BlockSpec((tile_n, fp_in), lambda i: (i, 0))
    node_out = pl.BlockSpec((tile_n, fp_out), lambda i: (i, 0))

    xh, hr_all, hc_all = pl.pallas_call(
        hyp_linear_kernel,
        grid=(n // tile_n,),
        in_specs=[
            node_in,
            const_spec((fp_in, fp_out)),
            const_spec((1, fp_out)),
            const_spec((fp_out, fp_out)),
            const_spec((fp_out, fp_out)),
            const_spec((1, fp_out)),
        ],
        out_specs=(node_out, node_out, node_out),
        out_shape=(
            jax.ShapeDtypeStruct((n, fp_out), jnp.float32),
            jax.ShapeDtypeStruct((n, fp_out), jnp.bfloat16),
            jax.ShapeDtypeStruct((n, fp_out), jnp.bfloat16),
        ),
        compiler_params=pltpu.CompilerParams(
            dimension_semantics=("parallel",),
            vmem_limit_bytes=vmem_limit),
    )(h_p, w_lin, bias, w1r, w1c, b1)

    # --- kernel 2: fused per-edge attention + aggregation + HNorm + HypAct ----
    tile_r = _pick_row_tile(n, 128)
    col_chunk = _pick_col_chunk(n, tile_r, fp_out, att_bytes, vmem_limit)

    # free wrapper-side reshapes so the kernel sees native 3-D views:
    #   rows as [1, tile_r, Fp], columns as [cols, 1, Fp],
    #   per-edge scalars (distance, mask) transposed to [col, row, 1].
    xh_rows = xh.reshape(1, n, fp_out)
    xh_cols = xh.reshape(n, 1, fp_out)
    hr_rows = hr_all.reshape(1, n, fp_out)
    hc_cols = hc_all.reshape(n, 1, fp_out)
    d_t = distances.reshape(n, n).T.reshape(n, n, 1)
    m_t = edge_mask.reshape(n, n).T.reshape(n, n, 1)

    out_p = pl.pallas_call(
        functools.partial(hyp_agg_norm_act_kernel, f_real=f_out,
                          col_chunk=col_chunk, att_dtype=att_dtype),
        grid=(n // tile_r,),
        in_specs=[
            pl.BlockSpec((1, tile_r, fp_out), lambda i: (0, i, 0)),  # x rows
            pl.BlockSpec((n, 1, fp_out), lambda i: (0, 0, 0)),       # x cols
            pl.BlockSpec((1, tile_r, fp_out), lambda i: (0, i, 0)),  # att row half
            pl.BlockSpec((n, 1, fp_out), lambda i: (0, 0, 0)),       # att col half
            pl.BlockSpec((n, tile_r, 1), lambda i: (0, i, 0)),       # distances^T
            pl.BlockSpec((n, tile_r, 1), lambda i: (0, i, 0)),       # edge mask^T
            const_spec((2, 1, fp_out)),                              # w1 edge rows
            const_spec((1, 1, fp_out)),                              # w2
            const_spec((1, 1, 1)),                                   # b2
            const_spec((1, fp_out)),                                 # ln gamma
            const_spec((1, fp_out)),                                 # ln beta
        ],
        out_specs=pl.BlockSpec((tile_r, fp_out), lambda i: (i, 0)),
        out_shape=jax.ShapeDtypeStruct((n, fp_out), jnp.float32),
        compiler_params=pltpu.CompilerParams(
            dimension_semantics=("parallel",),
            vmem_limit_bytes=vmem_limit),
    )(xh_rows, xh_cols, hr_rows, hc_cols, d_t, m_t,
      w1d3, w23, b23, gamma, beta)

    out = out_p[:, :f_out]
    return (out, distances, edges, node_mask, edge_mask)


# ----------------------------- Parameter / input construction ----------------

def make_params(key, f_in, f_out):
    ks = jax.random.split(key, 5)
    return {
        # nn.Linear(in, out, bias=False): stored as [F_in, F_out] (x @ W)
        "w_lin": 0.2 * jax.random.normal(ks[0], (f_in, f_out), jnp.float32),
        # nn.Parameter bias, reset to constant 0.1
        "bias": jnp.full((1, f_out), 0.1, jnp.float32),
        # DenseAtt(out_features, edge_dim=2):
        #   Linear(2F+2 -> F) -> SiLU -> Linear(F -> 1) -> Sigmoid, * edge_mask
        "att_w1_row": 0.2 * jax.random.normal(ks[1], (f_out, f_out), jnp.float32),
        "att_w1_col": 0.2 * jax.random.normal(ks[2], (f_out, f_out), jnp.float32),
        "att_w1_edge": 0.2 * jax.random.normal(ks[3], (2, f_out), jnp.float32),
        "att_b1": jnp.zeros((1, f_out), jnp.float32),
        "att_w2": 0.2 * jax.random.normal(ks[4], (1, f_out), jnp.float32),
        "att_b2": jnp.zeros((1, 1), jnp.float32),
        # LayerNorm(out_features - 1); index 0 (time coordinate) is masked out
        "ln_gamma": jnp.ones((1, f_out), jnp.float32),
        "ln_beta": jnp.zeros((1, f_out), jnp.float32),
    }


def make_inputs(key, n_nodes, f_in):
    k1, k2 = jax.random.split(key)
    # points on the Lorentz hyperboloid: x0 = sqrt(1 + ||x_rest||^2)
    rest = 0.5 * jax.random.normal(k1, (n_nodes, f_in - 1), jnp.float32)
    x0 = jnp.sqrt(1.0 + jnp.sum(rest * rest, axis=-1, keepdims=True))
    h = jnp.concatenate([x0, rest], axis=-1)

    # fully-connected row-major adjacency (incl. self loops), exactly as
    # HGCN.get_adj_matrix builds it
    rows, cols = np.meshgrid(np.arange(n_nodes), np.arange(n_nodes),
                             indexing="ij")
    row = jnp.asarray(rows.reshape(-1), dtype=jnp.int32)
    col = jnp.asarray(cols.reshape(-1), dtype=jnp.int32)
    n_edges = n_nodes * n_nodes

    distances = jax.random.uniform(k2, (n_edges, 1), jnp.float32)
    node_mask = jnp.ones((n_nodes, 1), jnp.float32)
    edge_mask = jnp.ones((n_edges, 1), jnp.float32)
    return (h, distances, (row, col), node_mask, edge_mask)


if __name__ == "__main__":
    N_NODES, F_IN, F_OUT = 8, 8, 8

    key = jax.random.PRNGKey(0)
    k_params, k_inputs = jax.random.split(key)
    params = make_params(k_params, F_IN, F_OUT)
    inputs = make_inputs(k_inputs, N_NODES, F_IN)

    out = hgc_layer_forward(inputs, params)
    h_out = jax.block_until_ready(out[0])

    assert h_out.shape == (N_NODES, F_OUT)
    assert bool(jnp.all(jnp.isfinite(h_out)))
    print("KERNEL_OK")
</pallas_src>

<mosaic_0001>
module attributes {stable_mosaic.version = 11 : i64} {
  func.func @hyp_linear_kernel(%arg0: i32, %arg1: memref<8x128xf32, #tpu.memory_space<vmem>>, %arg2: memref<128x128xf32, #tpu.memory_space<vmem>>, %arg3: memref<1x128xf32, #tpu.memory_space<vmem>>, %arg4: memref<128x128xbf16, #tpu.memory_space<vmem>>, %arg5: memref<128x128xbf16, #tpu.memory_space<vmem>>, %arg6: memref<1x128xf32, #tpu.memory_space<vmem>>, %arg7: memref<8x128xf32, #tpu.memory_space<vmem>>, %arg8: memref<8x128xbf16, #tpu.memory_space<vmem>>, %arg9: memref<8x128xbf16, #tpu.memory_space<vmem>>) attributes {dimension_semantics = [#tpu.dimension_semantics<parallel>], iteration_bounds = array<i64: 1>, scalar_prefetch = 0 : i64, scratch_operands = 0 : i64, tpu.core_type = #tpu.core_type<tc>, window_params = [{transform_indices = @transform_0, window_bounds = array<i64: 8, 128>}, {pipeline_mode = #tpu.pipeline_mode<synchronous>, transform_indices = @transform_1, window_bounds = array<i64: 128, 128>}, {pipeline_mode = #tpu.pipeline_mode<synchronous>, transform_indices = @transform_2, window_bounds = array<i64: 1, 128>}, {pipeline_mode = #tpu.pipeline_mode<synchronous>, transform_indices = @transform_3, window_bounds = array<i64: 128, 128>}, {pipeline_mode = #tpu.pipeline_mode<synchronous>, transform_indices = @transform_4, window_bounds = array<i64: 128, 128>}, {pipeline_mode = #tpu.pipeline_mode<synchronous>, transform_indices = @transform_5, window_bounds = array<i64: 1, 128>}, {transform_indices = @transform_6, window_bounds = array<i64: 8, 128>}, {transform_indices = @transform_7, window_bounds = array<i64: 8, 128>}, {transform_indices = @transform_8, window_bounds = array<i64: 8, 128>}]} {
    %c0 = arith.constant 0 : index
    %c0_0 = arith.constant 0 : index
    %0 = vector.load %arg1[%c0, %c0_0] : memref<8x128xf32, #tpu.memory_space<vmem>>, vector<8x128xf32>
    %1 = vector.extract_strided_slice %0 {offsets = [0, 0], sizes = [8, 1], strides = [1, 1]} : vector<8x128xf32> to vector<8x1xf32>
    %cst = arith.constant 1.00000012 : f32
    %2 = vector.broadcast %cst : f32 to vector<8x1xf32>
    %3 = arith.maximumf %1, %2 : vector<8x1xf32>
    %4 = arith.mulf %3, %3 : vector<8x1xf32>
    %cst_1 = arith.constant 1.000000e+00 : f32
    %5 = vector.broadcast %cst_1 : f32 to vector<8x1xf32>
    %6 = arith.subf %4, %5 : vector<8x1xf32>
    %7 = math.sqrt %6 : vector<8x1xf32>
    %8 = arith.addf %3, %7 : vector<8x1xf32>
    %9 = math.log %8 : vector<8x1xf32>
    %10 = tpu.iota {dimensions = array<i32: 1>} : vector<8x128xi32>
    %c0_i32 = arith.constant 0 : i32
    %11 = vector.broadcast %c0_i32 : i32 to vector<8x128xi32>
    %12 = arith.cmpi eq, %10, %11 : vector<8x128xi32>
    %cst_2 = arith.constant 0.000000e+00 : f32
    %13 = vector.broadcast %cst_2 : f32 to vector<8x128xf32>
    %14 = arith.select %12, %13, %0 : vector<8x128xi1>, vector<8x128xf32>
    %15 = arith.mulf %14, %14 : vector<8x128xf32>
    %cst_3 = arith.constant dense<0.000000e+00> : vector<8xf32>
    %16 = vector.multi_reduction <add>, %15, %cst_3 [1] : vector<8x128xf32> to vector<8xf32>
    %17 = vector.shape_cast %16 : vector<8xf32> to vector<8x1xf32>
    %cst_4 = arith.constant 1.000000e-15 : f32
    %18 = vector.broadcast %cst_4 : f32 to vector<8x1xf32>
    %19 = arith.maximumf %17, %18 : vector<8x1xf32>
    %20 = math.rsqrt %19 : vector<8x1xf32>
    %21 = vector.broadcast %9 : vector<8x1xf32> to vector<8x128xf32>
    %22 = arith.mulf %21, %14 : vector<8x128xf32>
    %23 = vector.broadcast %20 : vector<8x1xf32> to vector<8x128xf32>
    %24 = arith.mulf %22, %23 : vector<8x128xf32>
    %c0_5 = arith.constant 0 : index
    %c0_6 = arith.constant 0 : index
    %25 = vector.load %arg2[%c0_5, %c0_6] : memref<128x128xf32, #tpu.memory_space<vmem>>, vector<128x128xf32>
    %cst_7 = arith.constant dense<0.000000e+00> : vector<8x128xf32>
    %26 = tpu.matmul %24, %25, %cst_7 {dimension_numbers = #tpu.dot_dimension_numbers<[1], [0], [0], [1], [0, 0, 1, 1], [], []>} : vector<8x128xf32>, vector<128x128xf32>, vector<8x128xf32> -> vector<8x128xf32>
    %27 = tpu.iota {dimensions = array<i32: 1>} : vector<8x128xi32>
    %c0_i32_8 = arith.constant 0 : i32
    %28 = vector.broadcast %c0_i32_8 : i32 to vector<8x128xi32>
    %29 = arith.cmpi eq, %27, %28 : vector<8x128xi32>
    %cst_9 = arith.constant 0.000000e+00 : f32
    %30 = vector.broadcast %cst_9 : f32 to vector<8x128xf32>
    %31 = arith.select %29, %30, %26 : vector<8x128xi1>, vector<8x128xf32>
    %32 = tpu.iota {dimensions = array<i32: 1>} : vector<8x128xi32>
    %c0_i32_10 = arith.constant 0 : i32
    %33 = vector.broadcast %c0_i32_10 : i32 to vector<8x128xi32>
    %34 = arith.cmpi eq, %32, %33 : vector<8x128xi32>
    %cst_11 = arith.constant 0.000000e+00 : f32
    %35 = vector.broadcast %cst_11 : f32 to vector<8x128xf32>
    %36 = arith.select %34, %35, %31 : vector<8x128xi1>, vector<8x128xf32>
    %37 = arith.mulf %36, %36 : vector<8x128xf32>
    %cst_12 = arith.constant dense<0.000000e+00> : vector<8xf32>
    %38 = vector.multi_reduction <add>, %37, %cst_12 [1] : vector<8x128xf32> to vector<8xf32>
    %39 = vector.shape_cast %38 : vector<8xf32> to vector<8x1xf32>
    %cst_13 = arith.constant 1.000000e-15 : f32
    %40 = vector.broadcast %cst_13 : f32 to vector<8x1xf32>
    %41 = arith.maximumf %39, %40 : vector<8x1xf32>
    %42 = math.sqrt %41 : vector<8x1xf32>
    %43 = math.exp %42 : vector<8x1xf32>
    %cst_14 = arith.constant 1.000000e+00 : f32
    %44 = vector.broadcast %cst_14 : f32 to vector<8x1xf32>
    %45 = arith.divf %44, %43 : vector<8x1xf32>
    %46 = arith.subf %43, %45 : vector<8x1xf32>
    %cst_15 = arith.constant 5.000000e-01 : f32
    %47 = vector.broadcast %cst_15 : f32 to vector<8x1xf32>
    %48 = arith.mulf %47, %46 : vector<8x1xf32>
    %49 = arith.addf %43, %45 : vector<8x1xf32>
    %cst_16 = arith.constant 5.000000e-01 : f32
    %50 = vector.broadcast %cst_16 : f32 to vector<8x1xf32>
    %51 = arith.mulf %50, %49 : vector<8x1xf32>
    %52 = math.rsqrt %41 : vector<8x1xf32>
    %53 = arith.mulf %48, %52 : vector<8x1xf32>
    %54 = vector.broadcast %53 : vector<8x1xf32> to vector<8x128xf32>
    %55 = arith.mulf %54, %36 : vector<8x128xf32>
    %56 = tpu.iota {dimensions = array<i32: 1>} : vector<8x128xi32>
    %c0_i32_17 = arith.constant 0 : i32
    %57 = vector.broadcast %c0_i32_17 : i32 to vector<8x128xi32>
    %58 = arith.cmpi eq, %56, %57 : vector<8x128xi32>
    %59 = vector.shape_cast %51 : vector<8x1xf32> to vector<8x1xf32>
    %60 = vector.broadcast %59 : vector<8x1xf32> to vector<8x128xf32>
    %61 = arith.select %58, %60, %55 : vector<8x128xi1>, vector<8x128xf32>
    %c0_18 = arith.constant 0 : index
    %c0_19 = arith.constant 0 : index
    %62 = vector.load %arg3[%c0_18, %c0_19] : memref<1x128xf32, #tpu.memory_space<vmem>>, vector<1x128xf32>
    %63 = vector.shape_cast %62 : vector<1x128xf32> to vector<1x128xf32>
    %64 = vector.broadcast %63 : vector<1x128xf32> to vector<8x128xf32>
    %65 = tpu.iota {dimensions = array<i32: 1>} : vector<8x128xi32>
    %c0_i32_20 = arith.constant 0 : i32
    %66 = vector.broadcast %c0_i32_20 : i32 to vector<8x128xi32>
    %67 = arith.cmpi eq, %65, %66 : vector<8x128xi32>
    %cst_21 = arith.constant 0.000000e+00 : f32
    %68 = vector.broadcast %cst_21 : f32 to vector<8x128xf32>
    %69 = arith.select %67, %68, %64 : vector<8x128xi1>, vector<8x128xf32>
    %70 = arith.mulf %61, %69 : vector<8x128xf32>
    %cst_22 = arith.constant dense<0.000000e+00> : vector<8xf32>
    %71 = vector.multi_reduction <add>, %70, %cst_22 [1] : vector<8x128xf32> to vector<8xf32>
    %72 = vector.shape_cast %71 : vector<8xf32> to vector<8x1xf32>
    %73 = vector.extract_strided_slice %61 {offsets = [0, 0], sizes = [8, 1], strides = [1, 1]} : vector<8x128xf32> to vector<8x1xf32>
    %cst_23 = arith.constant 2.000000e+00 : f32
    %74 = vector.broadcast %cst_23 : f32 to vector<8x1xf32>
    %75 = arith.mulf %74, %73 : vector<8x1xf32>
    %76 = vector.extract_strided_slice %69 {offsets = [0, 0], sizes = [8, 1], strides = [1, 1]} : vector<8x128xf32> to vector<8x1xf32>
    %77 = arith.mulf %75, %76 : vector<8x1xf32>
    %78 = arith.subf %72, %77 : vector<8x1xf32>
    %79 = vector.extract_strided_slice %61 {offsets = [0, 0], sizes = [8, 1], strides = [1, 1]} : vector<8x128xf32> to vector<8x1xf32>
    %cst_24 = arith.constant 1.000000e+00 : f32
    %80 = vector.broadcast %cst_24 : f32 to vector<8x1xf32>
    %81 = arith.addf %80, %79 : vector<8x1xf32>
    %82 = arith.divf %78, %81 : vector<8x1xf32>
    %83 = tpu.iota {dimensions = array<i32: 1>} : vector<8x128xi32>
    %c0_i32_25 = arith.constant 0 : i32
    %84 = vector.broadcast %c0_i32_25 : i32 to vector<8x128xi32>
    %85 = arith.cmpi eq, %83, %84 : vector<8x128xi32>
    %cst_26 = arith.constant 1.000000e+00 : f32
    %86 = vector.broadcast %cst_26 : f32 to vector<8x128xf32>
    %87 = arith.addf %61, %86 : vector<8x128xf32>
    %88 = arith.select %85, %87, %61 : vector<8x128xi1>, vector<8x128xf32>
    %89 = vector.broadcast %82 : vector<8x1xf32> to vector<8x128xf32>
    %90 = arith.mulf %89, %88 : vector<8x128xf32>
    %91 = arith.addf %69, %90 : vector<8x128xf32>
    %92 = arith.mulf %91, %91 : vector<8x128xf32>
    %cst_27 = arith.constant dense<0.000000e+00> : vector<8xf32>
    %93 = vector.multi_reduction <add>, %92, %cst_27 [1] : vector<8x128xf32> to vector<8xf32>
    %94 = vector.shape_cast %93 : vector<8xf32> to vector<8x1xf32>
    %95 = vector.extract_strided_slice %91 {offsets = [0, 0], sizes = [8, 1], strides = [1, 1]} : vector<8x128xf32> to vector<8x1xf32>
    %cst_28 = arith.constant 2.000000e+00 : f32
    %96 = vector.broadcast %cst_28 : f32 to vector<8x1xf32>
    %97 = arith.mulf %96, %95 : vector<8x1xf32>
    %98 = vector.extract_strided_slice %91 {offsets = [0, 0], sizes = [8, 1], strides = [1, 1]} : vector<8x128xf32> to vector<8x1xf32>
    %99 = arith.mulf %97, %98 : vector<8x1xf32>
    %100 = arith.subf %94, %99 : vector<8x1xf32>
    %cst_29 = arith.constant 1.000000e-15 : f32
    %101 = vector.broadcast %cst_29 : f32 to vector<8x1xf32>
    %102 = arith.maximumf %100, %101 : vector<8x1xf32>
    %103 = math.sqrt %102 : vector<8x1xf32>
    %104 = math.exp %103 : vector<8x1xf32>
    %cst_30 = arith.constant 1.000000e+00 : f32
    %105 = vector.broadcast %cst_30 : f32 to vector<8x1xf32>
    %106 = arith.divf %105, %104 : vector<8x1xf32>
    %107 = arith.subf %104, %106 : vector<8x1xf32>
    %cst_31 = arith.constant 5.000000e-01 : f32
    %108 = vector.broadcast %cst_31 : f32 to vector<8x1xf32>
    %109 = arith.mulf %108, %107 : vector<8x1xf32>
    %110 = arith.addf %104, %106 : vector<8x1xf32>
    %cst_32 = arith.constant 5.000000e-01 : f32
    %111 = vector.broadcast %cst_32 : f32 to vector<8x1xf32>
    %112 = arith.mulf %111, %110 : vector<8x1xf32>
    %113 = vector.broadcast %112 : vector<8x1xf32> to vector<8x128xf32>
    %114 = arith.mulf %113, %61 : vector<8x128xf32>
    %115 = math.rsqrt %102 : vector<8x1xf32>
    %116 = arith.mulf %109, %115 : vector<8x1xf32>
    %117 = vector.broadcast %116 : vector<8x1xf32> to vector<8x128xf32>
    %118 = arith.mulf %117, %91 : vector<8x128xf32>
    %119 = arith.addf %114, %118 : vector<8x128xf32>
    %c0_33 = arith.constant 0 : index
    %c0_34 = arith.constant 0 : index
    %120 = vector.load %arg7[%c0_33, %c0_34] : memref<8x128xf32, #tpu.memory_space<vmem>>, vector<8x128xf32>
    tpu.vector_store %arg7[%c0_33, %c0_34], %119 {strides = array<i32>} : memref<8x128xf32, #tpu.memory_space<vmem>>, vector<8x128xf32>,
    %121 = vector.extract_strided_slice %119 {offsets = [0, 0], sizes = [8, 1], strides = [1, 1]} : vector<8x128xf32> to vector<8x1xf32>
    %cst_35 = arith.constant 1.00000012 : f32
    %122 = vector.broadcast %cst_35 : f32 to vector<8x1xf32>
    %123 = arith.maximumf %121, %122 : vector<8x1xf32>
    %124 = arith.mulf %123, %123 : vector<8x1xf32>
    %cst_36 = arith.constant 1.000000e+00 : f32
    %125 = vector.broadcast %cst_36 : f32 to vector<8x1xf32>
    %126 = arith.subf %124, %125 : vector<8x1xf32>
    %127 = math.sqrt %126 : vector<8x1xf32>
    %128 = arith.addf %123, %127 : vector<8x1xf32>
    %129 = math.log %128 : vector<8x1xf32>
    %130 = tpu.iota {dimensions = array<i32: 1>} : vector<8x128xi32>
    %c0_i32_37 = arith.constant 0 : i32
    %131 = vector.broadcast %c0_i32_37 : i32 to vector<8x128xi32>
    %132 = arith.cmpi eq, %130, %131 : vector<8x128xi32>
    %cst_38 = arith.constant 0.000000e+00 : f32
    %133 = vector.broadcast %cst_38 : f32 to vector<8x128xf32>
    %134 = arith.select %132, %133, %119 : vector<8x128xi1>, vector<8x128xf32>
    %135 = arith.mulf %134, %134 : vector<8x128xf32>
    %cst_39 = arith.constant dense<0.000000e+00> : vector<8xf32>
    %136 = vector.multi_reduction <add>, %135, %cst_39 [1] : vector<8x128xf32> to vector<8xf32>
    %137 = vector.shape_cast %136 : vector<8xf32> to vector<8x1xf32>
    %cst_40 = arith.constant 1.000000e-15 : f32
    %138 = vector.broadcast %cst_40 : f32 to vector<8x1xf32>
    %139 = arith.maximumf %137, %138 : vector<8x1xf32>
    %140 = math.rsqrt %139 : vector<8x1xf32>
    %141 = vector.broadcast %129 : vector<8x1xf32> to vector<8x128xf32>
    %142 = arith.mulf %141, %134 : vector<8x128xf32>
    %143 = vector.broadcast %140 : vector<8x1xf32> to vector<8x128xf32>
    %144 = arith.mulf %142, %143 : vector<8x128xf32>
    %145 = arith.truncf %144 : vector<8x128xf32> to vector<8x128xbf16>
    %c0_41 = arith.constant 0 : index
    %c0_42 = arith.constant 0 : index
    %146 = vector.load %arg4[%c0_41, %c0_42] : memref<128x128xbf16, #tpu.memory_space<vmem>>, vector<128x128xbf16>
    %cst_43 = arith.constant dense<0.000000e+00> : vector<8x128xf32>
    %147 = tpu.matmul %145, %146, %cst_43 {dimension_numbers = #tpu.dot_dimension_numbers<[1], [0], [0], [1], [0, 0, 1, 1], [], []>} : vector<8x128xbf16>, vector<128x128xbf16>, vector<8x128xf32> -> vector<8x128xf32>
    %c0_44 = arith.constant 0 : index
    %c0_45 = arith.constant 0 : index
    %148 = vector.load %arg6[%c0_44, %c0_45] : memref<1x128xf32, #tpu.memory_space<vmem>>, vector<1x128xf32>
    %149 = vector.broadcast %148 : vector<1x128xf32> to vector<8x128xf32>
    %150 = arith.addf %147, %149 : vector<8x128xf32>
    %c0_46 = arith.constant 0 : index
    %c0_47 = arith.constant 0 : index
    %151 = vector.load %arg5[%c0_46, %c0_47] : memref<128x128xbf16, #tpu.memory_space<vmem>>, vector<128x128xbf16>
    %cst_48 = arith.constant dense<0.000000e+00> : vector<8x128xf32>
    %152 = tpu.matmul %145, %151, %cst_48 {dimension_numbers = #tpu.dot_dimension_numbers<[1], [0], [0], [1], [0, 0, 1, 1], [], []>} : vector<8x128xbf16>, vector<128x128xbf16>, vector<8x128xf32> -> vector<8x128xf32>
    %153 = arith.truncf %150 : vector<8x128xf32> to vector<8x128xbf16>
    %c0_49 = arith.constant 0 : index
    %c0_50 = arith.constant 0 : index
    %154 = vector.load %arg8[%c0_49, %c0_50] : memref<8x128xbf16, #tpu.memory_space<vmem>>, vector<8x128xbf16>
    tpu.vector_store %arg8[%c0_49, %c0_50], %153 {strides = array<i32>} : memref<8x128xbf16, #tpu.memory_space<vmem>>, vector<8x128xbf16>,
    %155 = arith.truncf %152 : vector<8x128xf32> to vector<8x128xbf16>
    %c0_51 = arith.constant 0 : index
    %c0_52 = arith.constant 0 : index
    %156 = vector.load %arg9[%c0_51, %c0_52] : memref<8x128xbf16, #tpu.memory_space<vmem>>, vector<8x128xbf16>
    tpu.vector_store %arg9[%c0_51, %c0_52], %155 {strides = array<i32>} : memref<8x128xbf16, #tpu.memory_space<vmem>>, vector<8x128xbf16>,
    return
  }
  func.func @transform_0(%arg0: i32) -> (i32, i32) {
    %c0_i32 = arith.constant 0 : i32
    %c0_i32_0 = arith.constant 0 : i32
    return %arg0, %c0_i32 : i32, i32
  }
  func.func @transform_1(%arg0: i32) -> (i32, i32) {
    %c0_i32 = arith.constant 0 : i32
    %c0_i32_0 = arith.constant 0 : i32
    %c0_i32_1 = arith.constant 0 : i32
    return %c0_i32, %c0_i32_0 : i32, i32
  }
  func.func @transform_2(%arg0: i32) -> (i32, i32) {
    %c0_i32 = arith.constant 0 : i32
    %c0_i32_0 = arith.constant 0 : i32
    %c0_i32_1 = arith.constant 0 : i32
    return %c0_i32, %c0_i32_0 : i32, i32
  }
  func.func @transform_3(%arg0: i32) -> (i32, i32) {
    %c0_i32 = arith.constant 0 : i32
    %c0_i32_0 = arith.constant 0 : i32
    %c0_i32_1 = arith.constant 0 : i32
    return %c0_i32, %c0_i32_0 : i32, i32
  }
  func.func @transform_4(%arg0: i32) -> (i32, i32) {
    %c0_i32 = arith.constant 0 : i32
    %c0_i32_0 = arith.constant 0 : i32
    %c0_i32_1 = arith.constant 0 : i32
    return %c0_i32, %c0_i32_0 : i32, i32
  }
  func.func @transform_5(%arg0: i32) -> (i32, i32) {
    %c0_i32 = arith.constant 0 : i32
    %c0_i32_0 = arith.constant 0 : i32
    %c0_i32_1 = arith.constant 0 : i32
    return %c0_i32, %c0_i32_0 : i32, i32
  }
  func.func @transform_6(%arg0: i32) -> (i32, i32) {
    %c0_i32 = arith.constant 0 : i32
    %c0_i32_0 = arith.constant 0 : i32
    return %arg0, %c0_i32 : i32, i32
  }
  func.func @transform_7(%arg0: i32) -> (i32, i32) {
    %c0_i32 = arith.constant 0 : i32
    %c0_i32_0 = arith.constant 0 : i32
    return %arg0, %c0_i32 : i32, i32
  }
  func.func @transform_8(%arg0: i32) -> (i32, i32) {
    %c0_i32 = arith.constant 0 : i32
    %c0_i32_0 = arith.constant 0 : i32
    return %arg0, %c0_i32 : i32, i32
  }
}

</mosaic_0001>

<bundles_post_ra>
// kernel: tpu_custom_call.1
= control target key start
LH: loop header
LB: loop body
LE: loop exit
PB: predicated region body
PF: predicated region fallthrough
CT: control target
= control target key end

     0   :  { %14 = vsyncpa [#allocation3], 0  ;;  %s1141_s0 = inlined_call_operand.hbm [shape: f32[8,128], index: 0, kind: input, shape index: {}]   ;;  %s1142_s1 = inlined_call_operand.hbm [shape: f32[128,128], index: 1, kind: input, shape index: {}]   ;;  %s1143_s2 = inlined_call_operand.vmem [shape: f32[1,128], index: 2, kind: input, shape index: {}]   ;;  %s1144_s3 = inlined_call_operand.hbm [shape: bf16[128,128], index: 3, kind: input, shape index: {}]   ;;  %s1145_s4 = inlined_call_operand.hbm [shape: bf16[128,128], index: 4, kind: input, shape index: {}]   ;;  %s1146_s5 = inlined_call_operand.vmem [shape: f32[1,128], index: 5, kind: input, shape index: {}]   ;;  %s1147_s6 = inlined_call_operand.hbm [shape: f32[8,128], index: 6, kind: output, shape index: {0}]   ;;  %s1148_s7 = inlined_call_operand.hbm [shape: bf16[8,128], index: 7, kind: output, shape index: {1}]   ;;  %s1149_s8 = inlined_call_operand.hbm [shape: bf16[8,128], index: 8, kind: output, shape index: {2}]  }
   0x1   :  { %15 = vsyncpa [#allocation6], 0 }
   0x2   :  { %16 = vsyncpa [#allocation9], 0 }
   0x3   :  { %17 = vsyncpa [#allocation4], 0 }
   0x4   :  { %18 = vsyncpa [#allocation12], 0  ;;  %s952_s27 = smov [#allocation5]   ;;  %s788_s9 = scalar_lea.hbm %s1142_s1, 2048 }
   0x5   :  { %s34_s28 = sshll.u32 %s952_s27, 4  ;;  %p789_p0 = scmp.ne.s32.totalorder %s1142_s1, %s788_s9  ;;  %s35_s28 = int_to_ptr.vmem [resolvable:$true] %s34_s28 }
   0x6   :  { %p792_p1 = scmp.lt.u32.totalorder %s788_s9, %s1142_s1 }
   0x8   :  { %p794_p2 = pnand %p792_p1, %p789_p0 }
   0xa   :  { %797 = shalt.err (!%p794_p2)
}
   0xb   :  { %s798_s14 = scalar_lea.vmem %s35_s28, 2048  ;;  %p803_p4 = scmp.lt.s32.totalorder %s35_s28, %s35_s28 }
   0xc   :  { %p799_p3 = scmp.ne.s32.totalorder %s35_s28, %s798_s14  ;;  %p804_p5 = scmp.lt.s32.totalorder %s798_s14, %s798_s14 }
   0xe   :  { %p805_p6 = por %p804_p5, %p803_p4 }
  0x10   :  { %p806_p7 = pnand %p805_p6, %p799_p3 }
  0x12   :  { %809 = shalt.err (!%p806_p7)
}
  0x13   :  { %s953_s15 = smov 128   ;;  %s954_s16 = smov 8  }
  0x14   :  { %40 = dma.hbm_to_vmem [thread:$0]  %s1142_s1, 2048, %s35_s28, [#allocation6], %s953_s15, %s953_s15, %s954_s16  }
  0x15   :  { %s955_s19 = smov [#allocation2]   ;;  %s956_s21 = smov [#allocation7]  }
  0x16   :  { %s25_s20 = sshll.u32 %s955_s19, 4  ;;  %s48_s22 = sshll.u32 %s956_s21, 4  ;;  %s26_s20 = int_to_ptr.vmem [resolvable:$true] %s25_s20  ;;  %s49_s22 = int_to_ptr.vmem [resolvable:$true] %s48_s22 }
  0x17   :  { %s810_s25 = scalar_lea.hbm %s1141_s0, 128 }
  0x18   :  { %p811_p8 = scmp.ne.s32.totalorder %s1141_s0, %s810_s25  ;;  %p814_p9 = scmp.lt.u32.totalorder %s810_s25, %s1141_s0 }
  0x1a   :  { %p816_p10 = pnand %p814_p9, %p811_p8 }
  0x1c   :  { %819 = shalt.err (!%p816_p10)
}
  0x1d   :  { %s820_s1 = scalar_lea.vmem %s26_s20, 128  ;;  %p825_p12 = scmp.lt.s32.totalorder %s26_s20, %s26_s20 }
  0x1e   :  { %p821_p11 = scmp.ne.s32.totalorder %s26_s20, %s820_s1  ;;  %p826_p13 = scmp.lt.s32.totalorder %s820_s1, %s820_s1 }
  0x20   :  { %p827_p0 = por %p826_p13, %p825_p12 }
  0x22   :  { %p828_p1 = pnand %p827_p0, %p821_p11 }
  0x24   :  { %831 = shalt.err (!%p828_p1)
}
  0x25   :  { %28 = dma.hbm_to_vmem [thread:$0]  %s1141_s0, 128, %s26_s20, [#allocation3]  }
  0x26   :  { %s832_s12 = scalar_lea.hbm %s1144_s3, 1024 }
  0x27   :  { %p833_p2 = scmp.ne.s32.totalorder %s1144_s3, %s832_s12  ;;  %p836_p3 = scmp.lt.u32.totalorder %s832_s12, %s1144_s3 }
  0x29   :  { %p838_p4 = pnand %p836_p3, %p833_p2 }
  0x2b   :  { %841 = shalt.err (!%p838_p4)
}
  0x2c   :  { %s842_s17 = scalar_lea.vmem %s49_s22, 1024  ;;  %p847_p6 = scmp.lt.s32.totalorder %s49_s22, %s49_s22 }
  0x2d   :  { %p843_p5 = scmp.ne.s32.totalorder %s49_s22, %s842_s17  ;;  %p848_p7 = scmp.lt.s32.totalorder %s842_s17, %s842_s17 }
  0x2f   :  { %p849_p8 = por %p848_p7, %p847_p6 }
  0x31   :  { %p850_p9 = pnand %p849_p8, %p843_p5 }
  0x33   :  { %853 = shalt.err (!%p850_p9)
}
  0x34   :  { %s957_s0 = smov 64   ;;  %s958_s18 = smov 4  }
  0x35   :  { %54 = dma.hbm_to_vmem [thread:$0]  %s1144_s3, 1024, %s49_s22, [#allocation6], %s957_s0, %s957_s0, %s958_s18  }
  0x36   :  { %s959_s21 = smov [#allocation8]   ;;  %s854_s26 = scalar_lea.hbm %s1145_s4, 1024 }
  0x37   :  { %s60_s23 = sshll.u32 %s959_s21, 4  ;;  %p855_p10 = scmp.ne.s32.totalorder %s1145_s4, %s854_s26  ;;  %s61_s23 = int_to_ptr.vmem [resolvable:$true] %s60_s23 }
  0x38   :  { %p858_p11 = scmp.lt.u32.totalorder %s854_s26, %s1145_s4 }
  0x3a   :  { %p860_p12 = pnand %p858_p11, %p855_p10 }
  0x3c   :  { %863 = shalt.err (!%p860_p12)
}
  0x3d   :  { %s864_s28 = scalar_lea.vmem %s61_s23, 1024  ;;  %p869_p0 = scmp.lt.s32.totalorder %s61_s23, %s61_s23 }
  0x3e   :  { %p865_p13 = scmp.ne.s32.totalorder %s61_s23, %s864_s28  ;;  %p870_p1 = scmp.lt.s32.totalorder %s864_s28, %s864_s28 }
  0x40   :  { %p871_p2 = por %p870_p1, %p869_p0 }
  0x42   :  { %p872_p3 = pnand %p871_p2, %p865_p13 }
  0x44   :  { %875 = shalt.err (!%p872_p3)
}
  0x45   :  { %66 = dma.hbm_to_vmem [thread:$0]  %s1145_s4, 1024, %s61_s23, [#allocation9], %s957_s0, %s957_s0, %s958_s18  }
  0x46   :  { %942 = dma.done.wait [#allocation3], 128  }
  0x47   :  { %943 = vsyncadd [#allocation3], 4294967168 }
  0x48   :  { %944 = dma.done.wait [#allocation6], 3072  }
  0x49   :  { %945 = vsyncadd [#allocation6], 4294964224 }
  0x4a   :  { %946 = dma.done.wait [#allocation9], 1024  }
  0x4b   :  { %947 = vsyncadd [#allocation9], 4294966272  ;;  %v96_v0 = vlaneseq  ;;  %v960_v1 = vmov 0   ;;  %v961_v2 = vmov 0.0|0.0   ;;  %v82_v4 = vld [vmem:[#allocation2] sm:$0xff]  ;;  %v112_v5 = vld [vmem:[#allocation5] sm:$0xff] }
  0x4c   :  { %744 = vset.pattern.permute.xlu0 %v960_v1  ;;  %705 = vmatprep.subr.bf16.mxu0 %v961_v2  ;;  %v113_v6 = vld [vmem:[#allocation5 + $0x8] sm:$0xff]  ;;  %v83_v8 = vmax.f32 %v82_v4, 1.0000001  ;;  %v114_v10 = vld [vmem:[#allocation5 + $0x10] sm:$0xff]  ;;  %v115_v11 = vld [vmem:[#allocation5 + $0x18] sm:$0xff]  ;;  %vm962_vm3 = vmmov 0  }
  0x4d   :  { %v1060_v3 = vand.u32 127, %v96_v0  ;;  %745 = vset.pattern.permute.xlu1 %v960_v1  ;;  %v706_v9 = vpack.c.bf16 %v113_v6, %v112_v5  ;;  %v116_v13 = vld [vmem:[#allocation5 + $0x20] sm:$0xff]  ;;  %v117_v14 = vld [vmem:[#allocation5 + $0x28] sm:$0xff]  ;;  %v709_v16 = vpack.c.bf16 %v115_v11, %v114_v10  ;;  %v118_v19 = vld [vmem:[#allocation5 + $0x30] sm:$0xff]  ;;  %v963_v42 = vmov 0.0  }
  0x4e   :  { %v84_v15 = vmul.f32 %v83_v8, %v83_v8  ;;  %v712_v18 = vpack.c.bf16 %v117_v14, %v116_v13  ;;  %v119_v20 = vld [vmem:[#allocation5 + $0x38] sm:$0xff]  ;;  %v120_v26 = vld [vmem:[#allocation5 + $0x40] sm:$0xff]  ;;  %v121_v27 = vld [vmem:[#allocation5 + $0x48] sm:$0xff]  ;;  %662 = vmatprep.mubr.msk.f32.mxu0 %vm962_vm3, %v963_v42  ;;  %665 = vmatprep.subr.bf16.mxu1 %v963_v42 }
  0x4f   :  { %vm98_vm0 = vcmp.eq.s32.totalorder %v1060_v3, 0  ;;  %707 = vmatpush3.bf16.msra.mxu0 %v706_v9  ;;  %v715_v21 = vpack.c.bf16 %v119_v20, %v118_v19  ;;  %v122_v28 = vld [vmem:[#allocation5 + $0x50] sm:$0xff]  ;;  %v718_v30 = vpack.c.bf16 %v121_v27, %v120_v26  ;;  %v123_v31 = vld [vmem:[#allocation5 + $0x58] sm:$0xff]  ;;  %v124_v34 = vld [vmem:[#allocation5 + $0x60] sm:$0xff]  ;;  %681 = vmatprep.mubr.msk.bf16.mxu1 %vm962_vm3, %v963_v42 }
  0x50   :  { %v1065_v7 = vsel %vm98_vm0, 0.0, %v82_v4  ;;  %708 = vmatprep.subr.bf16.mxu0 %v961_v2  ;;  %v575_v17 = vadd.f32 -1.0, %v84_v15  ;;  %v721_v33 = vpack.c.bf16 %v123_v31, %v122_v28  ;;  %v125_v35 = vld [vmem:[#allocation5 + $0x68] sm:$0xff]  ;;  %v126_v39 = vld [vmem:[#allocation5 + $0x70] sm:$0xff]  ;;  %v127_v40 = vld [vmem:[#allocation5 + $0x78] sm:$0xff] }
  0x51   :  { %v100_v12 = vmul.f32 %v1065_v7, %v1065_v7  ;;  %v724_v36 = vpack.c.bf16 %v125_v35, %v124_v34  ;;  %v727_v41 = vpack.c.bf16 %v127_v40, %v126_v39  ;;  %v746_v40 = vld [vmem:[#allocation7] sm:$0xff]  }
  0x52   :  { %762 = vrsqrt.f32 %v575_v17  ;;  %vm88_vm1 = vcmp.eq.f32.partialorder %v575_v17, inf  ;;  %v91_v23 = vand.u32 2147483648, %v575_v17  ;;  %vm90_vm2 = vcmp.eq.f32.partialorder %v575_v17, 0.0  ;;  %666 = vmatpush3.bf16.msra.mxu1 %v746_v40 }
  0x53   :  { %101 = vadd.xlane.f32.xlu0 %v100_v12  ;;  %710 = vmatpush3.bf16.msra.mxu0 %v709_v16 }
  0x54   :  { %711 = vmatprep.subr.bf16.mxu0 %v961_v2  ;;  %667 = vmatprep.subr.bf16.mxu1 %v963_v42 }
  0x57   :  { %713 = vmatpush3.bf16.msra.mxu0 %v712_v18 }
  0x58   :  { %714 = vmatprep.subr.bf16.mxu0 %v961_v2 }
  0x5b   :  { %716 = vmatpush3.bf16.msra.mxu0 %v715_v21 }
  0x5c   :  { %717 = vmatprep.subr.bf16.mxu0 %v961_v2  ;;  %v763_v22 = vpop.eup %762 }
  0x5d   :  { %v87_v24 = vmul.f32 %v763_v22, %v575_v17 }
  0x5f   :  { %v89_v25 = vsel %vm88_vm1, %v575_v17, %v87_v24  ;;  %719 = vmatpush3.bf16.msra.mxu0 %v718_v30 }
  0x60   :  { %v92_v29 = vsel %vm90_vm2, %v91_v23, %v89_v25  ;;  %720 = vmatprep.subr.bf16.mxu0 %v961_v2 }
  0x61   :  { %v93_v32 = vadd.f32 %v92_v29, %v83_v8 }
  0x63   :  { %764 = vlog2.f32 %v93_v32  ;;  %722 = vmatpush3.bf16.msra.mxu0 %v721_v33 }
  0x64   :  { %723 = vmatprep.subr.bf16.mxu0 %v961_v2 }
  0x67   :  { %725 = vmatpush3.bf16.msra.mxu0 %v724_v36 }
  0x68   :  { %726 = vmatprep.subr.bf16.mxu0 %v961_v2  ;;  %v576_v2 = vld [vmem:[%s1143_s2] ss:$0 sm:$0xff]  ;;  %s964_s2 = smov [#allocation10]  }
  0x69   :  { %s537_s10 = sshll.u32 %s964_s2, 4  ;;  %s538_s10 = int_to_ptr.vmem [resolvable:$true] %s537_s10 }
  0x6a   :  { %s876_s11 = scalar_lea.vmem %s538_s10, 128  ;;  %p881_p5 = scmp.lt.s32.totalorder %s538_s10, %s538_s10 }
  0x6b   :  { %728 = vmatpush3.bf16.msra.mxu0 %v727_v41  ;;  %v747_v41 = vld [vmem:[#allocation8] sm:$0xff]   ;;  %p877_p4 = scmp.ne.s32.totalorder %s538_s10, %s876_s11  ;;  %p882_p6 = scmp.lt.s32.totalorder %s876_s11, %s876_s11 }
  0x6c   :  { %685 = vmatprep.subr.bf16.mxu0 %v963_v42 }
  0x6d   :  { %v765_v37 = vpop.eup %764  ;;  %p883_p7 = por %p882_p6, %p881_p5 }
  0x6e   :  { %v95_v38 = vmul.f32 0.6931472, %v765_v37 }
  0x6f   :  { %p884_p8 = pnand %p883_p7, %p877_p4 }
  0x70   :  { %107 = vperm.xlu0 %744, %v95_v38  }
  0xe0   :  { %v102_v43 = vpop.xlane.xlu0 %101 }
  0xe1   :  { %v103_v44 = vmax.f32 %v102_v43, 1e-15  ;;  %v748_v43 = vld [vmem:[#allocation7 + $0x8] sm:$0xff]  }
  0xe2   :  { %668 = vmatpush3.bf16.msra.mxu1 %v748_v43 }
  0xe3   :  { %766 = vrsqrt.f32 %v103_v44  ;;  %v749_v44 = vld [vmem:[#allocation8 + $0x8] sm:$0xff]   ;;  %669 = vmatprep.subr.bf16.mxu1 %v963_v42 }
  0xed   :  { %v767_v45 = vpop.eup %766 }
  0xef   :  { %v108_v46 = vpop.permute.xlu0 %107 }
  0xf0   :  { %v110_v47 = vmul.f32 %v108_v46, %v1065_v7  ;;  %v229_v7 = vsel %vm98_vm0, 0.0, %v576_v2  ;;  %v756_v2 = vld [vmem:[#allocation7 + $0x28] sm:$0xff]  }
  0xf2   :  { %v111_v48 = vmul.f32 %v767_v45, %v110_v47 }
  0xf4   :  { %663 = vmatmul.mubr.f32.vlgmr.msra.gmra.mrb[0].mxu0 %v111_v48 }
  0xf5   :  { %701 = vmatprep.mubr.msk.bf16.mxu0 %vm962_vm3, %v963_v42  ;;  %686 = vmatpush3.bf16.msra.mxu0 %v747_v41 }
  0xf6   :  { %687 = vmatprep.subr.bf16.mxu0 %v963_v42 }
  0xf9   :  { %688 = vmatpush3.bf16.msra.mxu0 %v749_v44 }
  0xfa   :  { %689 = vmatprep.subr.bf16.mxu0 %v963_v42 }
 0x1c7   :  { %v194_v49 = vpop.f32.mrb[0].mxu0 }
 0x1c8   :  { %v198_v50 = vsel %vm98_vm0, 0.0, %v194_v49  ;;  %v664_v51 = vpop.f32.mrb[1].mxu0 }
 0x1c9   :  { %v199_v52 = vmul.f32 %v198_v50, %v198_v50 }
 0x1cb   :  { %200 = vadd.xlane.f32.xlu1 %v199_v52 }
 0x258   :  { %v201_v53 = vpop.xlane.xlu1 %200 }
 0x259   :  { %v202_v54 = vmax.f32 %v201_v53, 1e-15 }
 0x25b   :  { %768 = vrsqrt.f32 %v202_v54  ;;  %vm205_vm4 = vcmp.eq.f32.partialorder %v202_v54, inf  ;;  %v208_v57 = vand.u32 2147483648, %v202_v54  ;;  %vm207_vm5 = vcmp.eq.f32.partialorder %v202_v54, 0.0 }
 0x265   :  { %v769_v55 = vpop.eup %768 }
 0x266   :  { %v204_v56 = vmul.f32 %v769_v55, %v202_v54 }
 0x268   :  { %v206_v58 = vsel %vm205_vm4, %v202_v54, %v204_v56 }
 0x269   :  { %v209_v59 = vsel %vm207_vm5, %v208_v57, %v206_v58  ;;  %v750_v57 = vld [vmem:[#allocation7 + $0x10] sm:$0xff]  }
 0x26a   :  { %v210_v60 = vmul.f32 1.442695, %v209_v59  ;;  %v751_v58 = vld [vmem:[#allocation8 + $0x10] sm:$0xff]   ;;  %670 = vmatpush3.bf16.msra.mxu1 %v750_v57 }
 0x26b   :  { %690 = vmatpush3.bf16.msra.mxu0 %v751_v58  ;;  %671 = vmatprep.subr.bf16.mxu1 %v963_v42 }
 0x26c   :  { %770 = vpow2.f32 %v210_v60  ;;  %691 = vmatprep.subr.bf16.mxu0 %v963_v42 }
 0x276   :  { %v771_v61 = vpop.eup %770 }
 0x277   :  { %772 = vrcp.f32 %v771_v61 }
 0x281   :  { %v773_v62 = vpop.eup %772 }
 0x282   :  { %v214_v63 = vsub.f32 %v771_v61, %v773_v62  ;;  %v216_v1 = vadd.f32 %v773_v62, %v771_v61  ;;  %v752_v61 = vld [vmem:[#allocation7 + $0x18] sm:$0xff]  }
 0x283   :  { %v753_v62 = vld [vmem:[#allocation8 + $0x18] sm:$0xff]   ;;  %672 = vmatpush3.bf16.msra.mxu1 %v752_v61 }
 0x284   :  { %v215_v0 = vmul.f32 0.5, %v214_v63  ;;  %v217_v5 = vmul.f32 0.5, %v216_v1  ;;  %692 = vmatpush3.bf16.msra.mxu0 %v753_v62  ;;  %v755_v1 = vld [vmem:[#allocation8 + $0x20] sm:$0xff]   ;;  %673 = vmatprep.subr.bf16.mxu1 %v963_v42 }
 0x285   :  { %693 = vmatprep.subr.bf16.mxu0 %v963_v42 }
 0x286   :  { %v219_v4 = vmul.f32 %v769_v55, %v215_v0  ;;  %v754_v0 = vld [vmem:[#allocation7 + $0x20] sm:$0xff]  }
 0x287   :  { %674 = vmatpush3.bf16.msra.mxu1 %v754_v0 }
 0x288   :  { %v220_v6 = vmul.f32 %v219_v4, %v198_v50  ;;  %694 = vmatpush3.bf16.msra.mxu0 %v755_v1  ;;  %v757_v4 = vld [vmem:[#allocation8 + $0x28] sm:$0xff]   ;;  %675 = vmatprep.subr.bf16.mxu1 %v963_v42 }
 0x289   :  { %695 = vmatprep.subr.bf16.mxu0 %v963_v42 }
 0x28a   :  { %v221_v8 = vsel %vm98_vm0, %v217_v5, %v220_v6  ;;  %v758_v5 = vld [vmem:[#allocation7 + $0x30] sm:$0xff]  }
 0x28b   :  { %v230_v9 = vmul.f32 %v229_v7, %v221_v8  ;;  %v236_v10 = vadd.f32 1.0, %v221_v8  ;;  %v233_v12 = vmul.f32 2.0, %v221_v8  ;;  %676 = vmatpush3.bf16.msra.mxu1 %v756_v2 }
 0x28c   :  { %696 = vmatpush3.bf16.msra.mxu0 %v757_v4  ;;  %677 = vmatprep.subr.bf16.mxu1 %v963_v42 }
 0x28d   :  { %231 = vadd.xlane.f32.xlu1 %v230_v9  ;;  %v239_v11 = vsel %vm98_vm0, %v236_v10, %v220_v6  ;;  %774 = vrcp.f32 %v236_v10  ;;  %v234_v13 = vmul.f32 %v233_v12, %v229_v7  ;;  %v759_v6 = vld [vmem:[#allocation8 + $0x30] sm:$0xff]   ;;  %697 = vmatprep.subr.bf16.mxu0 %v963_v42  ;;  %v760_v9 = vld [vmem:[#allocation7 + $0x38] sm:$0xff]  }
 0x28e   :  { %v761_v10 = vld [vmem:[#allocation8 + $0x38] sm:$0xff]  }
 0x28f   :  { %678 = vmatpush3.bf16.msra.mxu1 %v758_v5 }
 0x290   :  { %698 = vmatpush3.bf16.msra.mxu0 %v759_v6  ;;  %679 = vmatprep.subr.bf16.mxu1 %v963_v42 }
 0x291   :  { %699 = vmatprep.subr.bf16.mxu0 %v963_v42 }
 0x293   :  { %680 = vmatpush3.bf16.msra.mxu1 %v760_v9 }
 0x294   :  { %700 = vmatpush3.bf16.msra.mxu0 %v761_v10 }
 0x297   :  { %v775_v16 = vpop.eup %774 }
 0x31a   :  { %v232_v14 = vpop.xlane.xlu1 %231 }
 0x31b   :  { %v235_v15 = vsub.f32 %v232_v14, %v234_v13 }
 0x31d   :  { %v238_v17 = vmul.f32 %v775_v16, %v235_v15 }
 0x31f   :  { %242 = vperm.xlu1 %745, %v238_v17  }
 0x39e   :  { %v243_v18 = vpop.permute.xlu1 %242 }
 0x39f   :  { %v245_v19 = vmul.f32 %v243_v18, %v239_v11 }
 0x3a1   :  { %v246_v20 = vadd.f32 %v245_v19, %v229_v7 }
 0x3a3   :  { %v247_v21 = vmul.f32 %v246_v20, %v246_v20  ;;  %v250_v22 = vmul.f32 2.0, %v246_v20 }
 0x3a5   :  { %248 = vadd.xlane.f32.xlu1 %v247_v21  ;;  %v251_v23 = vmul.f32 %v250_v22, %v246_v20 }
 0x432   :  { %v249_v24 = vpop.xlane.xlu1 %248 }
 0x433   :  { %v252_v25 = vsub.f32 %v249_v24, %v251_v23 }
 0x435   :  { %v253_v26 = vmax.f32 %v252_v25, 1e-15 }
 0x437   :  { %776 = vrsqrt.f32 %v253_v26  ;;  %vm256_vm6 = vcmp.eq.f32.partialorder %v253_v26, inf  ;;  %v259_v29 = vand.u32 2147483648, %v253_v26  ;;  %vm258_vm7 = vcmp.eq.f32.partialorder %v253_v26, 0.0 }
 0x441   :  { %v777_v27 = vpop.eup %776 }
 0x442   :  { %v255_v28 = vmul.f32 %v777_v27, %v253_v26 }
 0x444   :  { %v257_v30 = vsel %vm256_vm6, %v253_v26, %v255_v28 }
 0x445   :  { %v260_v31 = vsel %vm258_vm7, %v259_v29, %v257_v30 }
 0x446   :  { %v261_v32 = vmul.f32 1.442695, %v260_v31 }
 0x448   :  { %778 = vpow2.f32 %v261_v32 }
 0x452   :  { %v779_v33 = vpop.eup %778 }
 0x453   :  { %780 = vrcp.f32 %v779_v33 }
 0x45d   :  { %v781_v34 = vpop.eup %780 }
 0x45e   :  { %v267_v35 = vadd.f32 %v781_v34, %v779_v33  ;;  %v265_v36 = vsub.f32 %v779_v33, %v781_v34 }
 0x460   :  { %v268_v37 = vmul.f32 0.5, %v267_v35  ;;  %v266_v38 = vmul.f32 0.5, %v265_v36 }
 0x462   :  { %271 = vperm.xlu0 %744, %v268_v37   ;;  %v276_v39 = vmul.f32 %v777_v27, %v266_v38 }
 0x466   :  { %279 = vperm.xlu0 %744, %v276_v39  }
 0x4e1   :  { %v272_v45 = vpop.permute.xlu0 %271 }
 0x4e2   :  { %v274_v47 = vmul.f32 %v272_v45, %v221_v8 }
 0x4e5   :  { %v280_v46 = vpop.permute.xlu0 %279 }
 0x4e6   :  { %v282_v48 = vmul.f32 %v280_v46, %v246_v20 }
 0x4e8   :  { %v283_v49 = vadd.f32 %v282_v48, %v274_v47 }
 0x4ea   :  { %v285_v50 = vmax.f32 %v283_v49, 1.0000001  ;;  %284 = vst [vmem:[#allocation10] sm:$0xff] %v283_v49  ;;  %v298_v51 = vsel %vm98_vm0, 0.0, %v283_v49 }
 0x4eb   :  { %v299_v52 = vmul.f32 %v298_v51, %v298_v51 }
 0x4ec   :  { %v286_v53 = vmul.f32 %v285_v50, %v285_v50 }
 0x4ed   :  { %300 = vadd.xlane.f32.xlu0 %v299_v52 }
 0x4ee   :  { %v577_v54 = vadd.f32 -1.0, %v286_v53 }
 0x4f0   :  { %782 = vrsqrt.f32 %v577_v54  ;;  %vm290_vm8 = vcmp.eq.f32.partialorder %v577_v54, inf  ;;  %v293_v59 = vand.u32 2147483648, %v577_v54  ;;  %vm292_vm9 = vcmp.eq.f32.partialorder %v577_v54, 0.0 }
 0x4fa   :  { %v783_v55 = vpop.eup %782 }
 0x4fb   :  { %v289_v56 = vmul.f32 %v783_v55, %v577_v54 }
 0x4fd   :  { %v291_v60 = vsel %vm290_vm8, %v577_v54, %v289_v56 }
 0x4fe   :  { %v294_v63 = vsel %vm292_vm9, %v293_v59, %v291_v60 }
 0x4ff   :  { %v295_v3 = vadd.f32 %v294_v63, %v285_v50 }
 0x501   :  { %784 = vlog2.f32 %v295_v3 }
 0x50b   :  { %v785_v7 = vpop.eup %784 }
 0x50c   :  { %v297_v8 = vmul.f32 0.6931472, %v785_v7 }
 0x50e   :  { %306 = vperm.xlu1 %745, %v297_v8  }
 0x57a   :  { %v301_v11 = vpop.xlane.xlu0 %300 }
 0x57b   :  { %v302_v12 = vmax.f32 %v301_v11, 1e-15 }
 0x57d   :  { %786 = vrsqrt.f32 %v302_v12 }
 0x587   :  { %v787_v15 = vpop.eup %786 }
 0x58d   :  { %v307_v13 = vpop.permute.xlu1 %306 }
 0x58e   :  { %v309_v14 = vmul.f32 %v307_v13, %v298_v51 }
 0x590   :  { %v310_v16 = vmul.f32 %v787_v15, %v309_v14 }
 0x592   :  { %v311_v17 = vpack.c.bf16 %v310_v16, %v310_v16 }
 0x594   :  { %682 = vmatmul.mubr.bf16.vlgmr.msra.gmra.mrb[0].mxu1 %v311_v17  ;;  %702 = vmatmul.mubr.bf16.vlgmr.msra.gmra.mrb[4].mxu0 %v311_v17 }
 0x595   :  { %887 = shalt.err (!%p884_p8)
}
 0x596   :  { %s888_s14 = scalar_lea.hbm %s1147_s6, 128 }
 0x597   :  { %p889_p9 = scmp.ne.s32.totalorder %s1147_s6, %s888_s14  ;;  %p892_p10 = scmp.lt.u32.totalorder %s888_s14, %s1147_s6 }
 0x599   :  { %p894_p11 = pnand %p892_p10, %p889_p9 }
 0x59b   :  { %897 = shalt.err (!%p894_p11)
}
 0x59c   :  { %540 = dma.vmem_to_hbm [thread:$0]  %s538_s10, 128, %s1147_s6, [#allocation4]   ;;  %v578_v42 = vld [vmem:[%s1146_s5] ss:$0 sm:$0xff] }
 0x59d   :  { %s965_s23 = smov [#allocation11]   ;;  %s966_s25 = smov [#allocation13]  }
 0x59e   :  { %s547_s24 = sshll.u32 %s965_s23, 4  ;;  %s557_s26 = sshll.u32 %s966_s25, 4  ;;  %s548_s24 = int_to_ptr.vmem [resolvable:$true] %s547_s24  ;;  %s558_s26 = int_to_ptr.vmem [resolvable:$true] %s557_s26 }
 0x59f   :  { %s898_s5 = scalar_lea.vmem %s548_s24, 64  ;;  %p903_p13 = scmp.lt.s32.totalorder %s548_s24, %s548_s24 }
 0x5a0   :  { %p899_p12 = scmp.ne.s32.totalorder %s548_s24, %s898_s5  ;;  %p904_p0 = scmp.lt.s32.totalorder %s898_s5, %s898_s5 }
 0x5a2   :  { %p905_p1 = por %p904_p0, %p903_p13 }
 0x5a4   :  { %p906_p2 = pnand %p905_p1, %p899_p12 }
 0x667   :  { %v417_v18 = vpop.f32.mrb[0].mxu1  ;;  %v521_v19 = vpop.f32.mrb[4].mxu0 }
 0x668   :  { %v418_v20 = vadd.f32 %v578_v42, %v417_v18  ;;  %v529_v21 = vpack.c.bf16 %v521_v19, %v521_v19  ;;  %v683_v22 = vpop.f32.mrb[1].mxu1  ;;  %v703_v23 = vpop.f32.mrb[5].mxu0 }
 0x669   :  { %v420_v24 = vpop.f32.mrb[2].mxu1  ;;  %v524_v25 = vpop.f32.mrb[6].mxu0 }
 0x66a   :  { %v527_v26 = vpack.c.bf16 %v418_v20, %v418_v20  ;;  %530 = vst [vmem:[#allocation13] sm:$0xf] %v529_v21  ;;  %v684_v27 = vpop.f32.mrb[3].mxu1  ;;  %v704_v28 = vpop.f32.mrb[7].mxu0 }
 0x66c   :  { %528 = vst [vmem:[#allocation11] sm:$0xf] %v527_v26 }
 0x66d   :  { %909 = shalt.err (!%p906_p2)
}
 0x66e   :  { %s910_s29 = scalar_lea.hbm %s1148_s7, 64 }
 0x66f   :  { %p911_p3 = scmp.ne.s32.totalorder %s1148_s7, %s910_s29  ;;  %p914_p4 = scmp.lt.u32.totalorder %s910_s29, %s1148_s7 }
 0x671   :  { %p916_p5 = pnand %p914_p4, %p911_p3 }
 0x673   :  { %919 = shalt.err (!%p916_p5)
}
 0x674   :  { %550 = dma.vmem_to_hbm [thread:$0]  %s548_s24, 64, %s1148_s7, [#allocation12]  }
 0x675   :  { %s920_s9 = scalar_lea.vmem %s558_s26, 64  ;;  %p925_p7 = scmp.lt.s32.totalorder %s558_s26, %s558_s26 }
 0x676   :  { %p921_p6 = scmp.ne.s32.totalorder %s558_s26, %s920_s9  ;;  %p926_p8 = scmp.lt.s32.totalorder %s920_s9, %s920_s9 }
 0x678   :  { %p927_p9 = por %p926_p8, %p925_p7 }
 0x67a   :  { %p928_p10 = pnand %p927_p9, %p921_p6 }
 0x67c   :  { %931 = shalt.err (!%p928_p10)
}
 0x67d   :  { %s932_s11 = scalar_lea.hbm %s1149_s8, 64 }
 0x67e   :  { %p933_p11 = scmp.ne.s32.totalorder %s1149_s8, %s932_s11  ;;  %p936_p12 = scmp.lt.u32.totalorder %s932_s11, %s1149_s8 }
 0x680   :  { %p938_p13 = pnand %p936_p12, %p933_p11 }
 0x682   :  { %941 = shalt.err (!%p938_p13)
}
 0x683   :  { %560 = dma.vmem_to_hbm [thread:$0]  %s558_s26, 64, %s1149_s8, [#allocation12]  }
 0x684   :  { %948 = dma.done.wait [#allocation4], 128  }
 0x685   :  { %949 = vsyncadd [#allocation4], 4294967168 }
 0x686   :  { %950 = dma.done.wait [#allocation12], 128  }
 0x687   :  { %951 = vsyncadd [#allocation12], 4294967168 }
 0x688   :  { %570 = vsyncpa [#allocation3], 1 }
 0x689   :  { %571 = vsyncpa [#allocation6], 1 }
 0x68a   :  { %572 = vsyncpa [#allocation9], 1 }
 0x68b   :  { %573 = vsyncpa [#allocation4], 1 }
 0x68c   :  { %574 = vsyncpa [#allocation12], 1 }

</bundles_post_ra>
